<compile_context>
chip_gen: v7x
topology: tpu7x:2x2x1
jax: 0.10.0
libtpu: 0.0.40
codegen_flags: <defaults>
</compile_context>

<pallas_src>
import jax
import jax.numpy as jnp
from jax.experimental import pallas as pl
from jax.experimental.pallas import tpu as pltpu


def _round_up(x: int, m: int) -> int:
    return ((x + m - 1) // m) * m


def gemv_kernel(alpha_ref, beta_ref, a_ref, x_ref, b_ref, o_ref, acc_ref):
    # grid = (row_tiles, k_tiles); K (reduction) axis is last.
    k = pl.program_id(1)

    @pl.when(k == 0)
    def _init():
        acc_ref[...] = jnp.zeros_like(acc_ref)

    # Fold alpha into the small (TK, 1) x tile instead of scaling the result
    # on every tile -> keeps VALU work negligible; MXU accumulates in f32.
    x_scaled = x_ref[...].astype(jnp.float32) * alpha_ref[0, 0]
    acc_ref[...] += jnp.dot(a_ref[...], x_scaled, preferred_element_type=jnp.float32)

    @pl.when(k == pl.num_programs(1) - 1)
    def _finalize():
        out = acc_ref[...] + beta_ref[0, 0] * b_ref[...].astype(jnp.float32)
        o_ref[...] = out.astype(o_ref.dtype)


def gemv_forward(alpha, A, x, beta, b, *, max_tm=512, max_tk=1024):
    """out = alpha * A @ x + beta * b  (== M^T @ [x; 1] with the programmed matrix)."""
    rows, cols = A.shape
    assert x.shape == (cols, 1), f"Input x is wrong shape {x.shape}, should be {(cols, 1)}"
    assert b.shape == (rows, 1)
    assert alpha.shape == (1,) and beta.shape == (1,)

    # Tile sizes: respect (8, 128) layout granularity, cap so that the
    # double-buffered A tiles (2 * TM*TK*4 B = 4 MiB at 512x1024 f32) stay far
    # under every generation's scoped-VMEM budget (v5e 16 MiB default,
    # v6e 32 MiB, v7x 64 MiB physical).
    tm = min(max_tm, _round_up(rows, 8))
    tk = min(max_tk, _round_up(cols, 128))
    rows_p = _round_up(rows, tm)
    cols_p = _round_up(cols, tk)

    # Zero-pad to the tile grid (zeros are exact no-ops in the accumulation).
    A_p = jnp.pad(A, ((0, rows_p - rows), (0, cols_p - cols)))
    x_p = jnp.pad(x, ((0, cols_p - cols), (0, 0)))
    b_p = jnp.pad(b, ((0, rows_p - rows), (0, 0)))

    alpha2 = alpha.reshape(1, 1).astype(jnp.float32)
    beta2 = beta.reshape(1, 1).astype(jnp.float32)

    grid = (rows_p // tm, cols_p // tk)

    out_p = pl.pallas_call(
        gemv_kernel,
        out_shape=jax.ShapeDtypeStruct((rows_p, 1), A.dtype),
        grid=grid,
        in_specs=[
            pl.BlockSpec(memory_space=pltpu.MemorySpace.SMEM),      # alpha (1,1)
            pl.BlockSpec(memory_space=pltpu.MemorySpace.SMEM),      # beta  (1,1)
            pl.BlockSpec((tm, tk), lambda i, k: (i, k)),            # A tile (streamed)
            pl.BlockSpec((tk, 1), lambda i, k: (k, 0)),             # x tile
            pl.BlockSpec((tm, 1), lambda i, k: (i, 0)),             # b tile (constant over k)
        ],
        out_specs=pl.BlockSpec((tm, 1), lambda i, k: (i, 0)),       # resident across K
        scratch_shapes=[pltpu.VMEM((tm, 1), jnp.float32)],          # accumulator
        compiler_params=pltpu.CompilerParams(
            dimension_semantics=("parallel", "arbitrary"),
            vmem_limit_bytes=32 * 1024 * 1024,
        ),
    )(alpha2, beta2, A_p, x_p, b_p)

    return out_p[:rows, :]


if __name__ == "__main__":
    key = jax.random.PRNGKey(0)

    def run_case(rows, cols, k):
        k_a, k_x, k_b = jax.random.split(k, 3)
        A = jax.random.normal(k_a, (rows, cols), dtype=jnp.float32)
        x = jax.random.normal(k_x, (cols, 1), dtype=jnp.float32)
        b = jax.random.normal(k_b, (rows, 1), dtype=jnp.float32)
        alpha = jnp.array([1.5], dtype=jnp.float32)
        beta = jnp.array([0.5], dtype=jnp.float32)

        out = jax.block_until_ready(gemv_forward(alpha, A, x, beta, b))

        # Reference: the programmed-crossbar formulation M^T @ [x; 1]
        M = jnp.concatenate([A.T * alpha, b.T * beta], axis=0)     # (cols+1, rows)
        xa = jnp.concatenate([x, jnp.ones((1, 1), jnp.float32)], axis=0)
        ref = M.T @ xa                                             # (rows, 1)

        assert out.shape == (rows, 1), out.shape
        err = float(jnp.max(jnp.abs(out - ref)))
        assert jnp.allclose(out, ref, atol=2e-4, rtol=1e-4), err

    k1, k2 = jax.random.split(key)
    run_case(32, 16, k1)       # small, single-tile path (grid (1,1))
    run_case(520, 1152, k2)    # padded, multi-tile path (grid (2,2)) exercising the K accumulator
    print("KERNEL_OK")
</pallas_src>

<mosaic_0001>
module attributes {stable_mosaic.version = 11 : i64} {
  func.func @gemv_kernel(%arg0: i32, %arg1: i32, %arg2: memref<1x1xf32, #tpu.memory_space<smem>>, %arg3: memref<1x1xf32, #tpu.memory_space<smem>>, %arg4: memref<32x128xf32, #tpu.memory_space<vmem>>, %arg5: memref<128x1xf32, #tpu.memory_space<vmem>>, %arg6: memref<32x1xf32, #tpu.memory_space<vmem>>, %arg7: memref<32x1xf32, #tpu.memory_space<vmem>>, %arg8: memref<32x1xf32, #tpu.memory_space<vmem>>) attributes {dimension_semantics = [#tpu.dimension_semantics<parallel>, #tpu.dimension_semantics<arbitrary>], iteration_bounds = array<i64: 1, 1>, scalar_prefetch = 0 : i64, scratch_operands = 1 : i64, tpu.core_type = #tpu.core_type<tc>, window_params = [{transform_indices = @transform_0, window_bounds = array<i64: 1, 1>}, {transform_indices = @transform_1, window_bounds = array<i64: 1, 1>}, {transform_indices = @transform_2, window_bounds = array<i64: 32, 128>}, {transform_indices = @transform_3, window_bounds = array<i64: 128, 1>}, {transform_indices = @transform_4, window_bounds = array<i64: 32, 1>}, {transform_indices = @transform_5, window_bounds = array<i64: 32, 1>}]} {
    %c0_i32 = arith.constant 0 : i32
    %0 = arith.cmpi eq, %arg1, %c0_i32 : i32
    %1 = arith.extui %0 : i1 to i32
    %c0_i32_0 = arith.constant 0 : i32
    %2 = arith.cmpi ne, %1, %c0_i32_0 : i32
    scf.if %2 {
      %cst_12 = arith.constant 0.000000e+00 : f32
      %15 = vector.broadcast %cst_12 : f32 to vector<32x1xf32>
      %c0_13 = arith.constant 0 : index
      %c0_14 = arith.constant 0 : index
      %16 = vector.load %arg8[%c0_13, %c0_14] : memref<32x1xf32, #tpu.memory_space<vmem>>, vector<32x1xf32>
      tpu.vector_store %arg8[%c0_13, %c0_14], %15 {strides = array<i32>} : memref<32x1xf32, #tpu.memory_space<vmem>>, vector<32x1xf32>,
    } else {
    }
    %c0 = arith.constant 0 : index
    %c0_1 = arith.constant 0 : index
    %3 = vector.load %arg5[%c0, %c0_1] : memref<128x1xf32, #tpu.memory_space<vmem>>, vector<128x1xf32>
    %c0_2 = arith.constant 0 : index
    %c0_3 = arith.constant 0 : index
    %4 = memref.load %arg2[%c0_2, %c0_3] : memref<1x1xf32, #tpu.memory_space<smem>>
    %5 = vector.broadcast %4 : f32 to vector<128x1xf32>
    %6 = arith.mulf %3, %5 : vector<128x1xf32>
    %c0_4 = arith.constant 0 : index
    %c0_5 = arith.constant 0 : index
    %7 = vector.load %arg8[%c0_4, %c0_5] : memref<32x1xf32, #tpu.memory_space<vmem>>, vector<32x1xf32>
    %c0_6 = arith.constant 0 : index
    %c0_7 = arith.constant 0 : index
    %8 = vector.load %arg4[%c0_6, %c0_7] : memref<32x128xf32, #tpu.memory_space<vmem>>, vector<32x128xf32>
    %cst = arith.constant dense<0.000000e+00> : vector<32x1xf32>
    %9 = tpu.matmul %8, %6, %cst {dimension_numbers = #tpu.dot_dimension_numbers<[1], [0], [0], [1], [0, 0, 1, 1], [], []>} : vector<32x128xf32>, vector<128x1xf32>, vector<32x1xf32> -> vector<32x1xf32>
    %10 = arith.addf %7, %9 : vector<32x1xf32>
    %c0_8 = arith.constant 0 : index
    %c0_9 = arith.constant 0 : index
    %11 = vector.load %arg8[%c0_8, %c0_9] : memref<32x1xf32, #tpu.memory_space<vmem>>, vector<32x1xf32>
    tpu.vector_store %arg8[%c0_8, %c0_9], %10 {strides = array<i32>} : memref<32x1xf32, #tpu.memory_space<vmem>>, vector<32x1xf32>,
    %c0_i32_10 = arith.constant 0 : i32
    %12 = arith.cmpi eq, %arg1, %c0_i32_10 : i32
    %13 = arith.extui %12 : i1 to i32
    %c0_i32_11 = arith.constant 0 : i32
    %14 = arith.cmpi ne, %13, %c0_i32_11 : i32
    scf.if %14 {
      %c0_12 = arith.constant 0 : index
      %c0_13 = arith.constant 0 : index
      %15 = vector.load %arg8[%c0_12, %c0_13] : memref<32x1xf32, #tpu.memory_space<vmem>>, vector<32x1xf32>
      %c0_14 = arith.constant 0 : index
      %c0_15 = arith.constant 0 : index
      %16 = memref.load %arg3[%c0_14, %c0_15] : memref<1x1xf32, #tpu.memory_space<smem>>
      %c0_16 = arith.constant 0 : index
      %c0_17 = arith.constant 0 : index
      %17 = vector.load %arg6[%c0_16, %c0_17] : memref<32x1xf32, #tpu.memory_space<vmem>>, vector<32x1xf32>
      %18 = vector.broadcast %16 : f32 to vector<32x1xf32>
      %19 = arith.mulf %18, %17 : vector<32x1xf32>
      %20 = arith.addf %15, %19 : vector<32x1xf32>
      %c0_18 = arith.constant 0 : index
      %c0_19 = arith.constant 0 : index
      %21 = vector.load %arg7[%c0_18, %c0_19] : memref<32x1xf32, #tpu.memory_space<vmem>>, vector<32x1xf32>
      tpu.vector_store %arg7[%c0_18, %c0_19], %20 {strides = array<i32>} : memref<32x1xf32, #tpu.memory_space<vmem>>, vector<32x1xf32>,
    } else {
    }
    return
  }
  func.func @transform_0(%arg0: i32, %arg1: i32) -> (i32, i32) {
    %c0_i32 = arith.constant 0 : i32
    %c0_i32_0 = arith.constant 0 : i32
    %c0_i32_1 = arith.constant 0 : i32
    return %c0_i32, %c0_i32_0 : i32, i32
  }
  func.func @transform_1(%arg0: i32, %arg1: i32) -> (i32, i32) {
    %c0_i32 = arith.constant 0 : i32
    %c0_i32_0 = arith.constant 0 : i32
    %c0_i32_1 = arith.constant 0 : i32
    return %c0_i32, %c0_i32_0 : i32, i32
  }
  func.func @transform_2(%arg0: i32, %arg1: i32) -> (i32, i32) {
    %c0_i32 = arith.constant 0 : i32
    return %arg0, %arg1 : i32, i32
  }
  func.func @transform_3(%arg0: i32, %arg1: i32) -> (i32, i32) {
    %c0_i32 = arith.constant 0 : i32
    %c0_i32_0 = arith.constant 0 : i32
    return %arg1, %c0_i32 : i32, i32
  }
  func.func @transform_4(%arg0: i32, %arg1: i32) -> (i32, i32) {
    %c0_i32 = arith.constant 0 : i32
    %c0_i32_0 = arith.constant 0 : i32
    return %arg0, %c0_i32 : i32, i32
  }
  func.func @transform_5(%arg0: i32, %arg1: i32) -> (i32, i32) {
    %c0_i32 = arith.constant 0 : i32
    %c0_i32_0 = arith.constant 0 : i32
    return %arg0, %c0_i32 : i32, i32
  }
}

</mosaic_0001>

<bundles_post_ra>
// kernel: tpu_custom_call.1
= control target key start
LH: loop header
LB: loop body
LE: loop exit
PB: predicated region body
PF: predicated region fallthrough
CT: control target
= control target key end

     0   :  { %vm26_vm0 = vcmask 7168   ;;  %v303_v4 = vmov 0.0   ;;  %s454_s0 = inlined_call_operand.<no memory space> [shape: f32[1,1], index: 0, kind: input, shape index: {}]   ;;  %s455_s3 = inlined_call_operand.vmem [shape: f32[128,1], index: 3, kind: input, shape index: {}]   ;;  %s456_s2 = inlined_call_operand.vmem [shape: f32[32,128], index: 2, kind: input, shape index: {}]   ;;  %s457_s1 = inlined_call_operand.<no memory space> [shape: f32[1,1], index: 1, kind: input, shape index: {}]   ;;  %s458_s4 = inlined_call_operand.vmem [shape: f32[32,1], index: 4, kind: input, shape index: {}]   ;;  %s459_s5 = inlined_call_operand.vmem [shape: f32[32,1], index: 5, kind: output, shape index: {}]  }
   0x1   :  { %v31_v0 = vld [vmem:[%s455_s3] sm:$0xff]  ;;  %v32_v1 = vld [vmem:[%s455_s3 + $0x8] sm:$0xff]  ;;  %v343_v2 = vstv %s454_s0  ;;  %v33_v3 = vld [vmem:[%s455_s3 + $0x10] sm:$0xff]  ;;  %28 = vst.msk [vmem:[#allocation2 + $0x8] sm:$0xff] %vm26_vm0, %v303_v4 }
   0x2   :  { %27 = vst.msk [vmem:[#allocation2] sm:$0xff] %vm26_vm0, %v303_v4  ;;  %29 = vst.msk [vmem:[#allocation2 + $0x10] sm:$0xff] %vm26_vm0, %v303_v4  ;;  %v49_v5 = vmul.f32 %v343_v2, %v31_v0  ;;  %v50_v6 = vmul.f32 %v343_v2, %v32_v1  ;;  %v34_v7 = vld [vmem:[%s455_s3 + $0x18] sm:$0xff]  ;;  %v51_v8 = vmul.f32 %v343_v2, %v33_v3  ;;  %v35_v9 = vld [vmem:[%s455_s3 + $0x20] sm:$0xff]  ;;  %v179_v59 = vstv %s457_s1 }
   0x3   :  { %30 = vst.msk [vmem:[#allocation2 + $0x18] sm:$0xff] %vm26_vm0, %v303_v4  ;;  %v36_v10 = vld [vmem:[%s455_s3 + $0x28] sm:$0xff]  ;;  %v52_v11 = vmul.f32 %v343_v2, %v34_v7  ;;  %v53_v13 = vmul.f32 %v343_v2, %v35_v9  ;;  %v37_v16 = vld [vmem:[%s455_s3 + $0x30] sm:$0xff]  ;;  %v38_v17 = vld [vmem:[%s455_s3 + $0x38] sm:$0xff] }
   0x4   :  { %v254_v12 = vpack.c.bf16 %v50_v6, %v49_v5  ;;  %v54_v14 = vmul.f32 %v343_v2, %v36_v10  ;;  %v69_v18 = vld [vmem:[%s456_s2] sm:$0xff]  ;;  %v71_v19 = vld [vmem:[%s456_s2 + $0x10] sm:$0xff]  ;;  %v55_v21 = vmul.f32 %v343_v2, %v37_v16  ;;  %v56_v22 = vmul.f32 %v343_v2, %v38_v17  ;;  %v40_v24 = vld [vmem:[%s455_s3 + $0x48] sm:$0xff] }
   0x5   :  { %v258_v15 = vpack.c.bf16 %v52_v11, %v51_v8  ;;  %v39_v23 = vld [vmem:[%s455_s3 + $0x40] sm:$0xff]  ;;  %248 = vmatprep.mubr.f32.mxu0 %v69_v18  ;;  %251 = vmatprep.mubr.f32.mxu1 %v71_v19  ;;  %v58_v27 = vmul.f32 %v343_v2, %v40_v24  ;;  %v41_v28 = vld [vmem:[%s455_s3 + $0x50] sm:$0xff]  ;;  %v42_v29 = vld [vmem:[%s455_s3 + $0x58] sm:$0xff] }
   0x6   :  { %255 = vmatprep.subr.bf16.mxu0 %v254_v12  ;;  %286 = vmatprep.subr.bf16.mxu1 %v254_v12  ;;  %v262_v20 = vpack.c.bf16 %v54_v14, %v53_v13  ;;  %v266_v25 = vpack.c.bf16 %v56_v22, %v55_v21  ;;  %v57_v26 = vmul.f32 %v343_v2, %v39_v23  ;;  %v43_v33 = vld [vmem:[%s455_s3 + $0x60] sm:$0xff]  ;;  %v44_v34 = vld [vmem:[%s455_s3 + $0x68] sm:$0xff]  ;;  %v45_v38 = vld [vmem:[%s455_s3 + $0x70] sm:$0xff] }
   0x7   :  { %257 = vmatpush3.bf16.msra.mxu0 %v254_v12  ;;  %294 = vmatpush3.bf16.msra.mxu1 %v254_v12  ;;  %v59_v31 = vmul.f32 %v343_v2, %v41_v28  ;;  %v60_v32 = vmul.f32 %v343_v2, %v42_v29  ;;  %v61_v36 = vmul.f32 %v343_v2, %v43_v33  ;;  %v46_v39 = vld [vmem:[%s455_s3 + $0x78] sm:$0xff]  ;;  %v70_v44 = vld [vmem:[%s456_s2 + $0x8] sm:$0xff]  ;;  %v175_v61 = vld [vmem:[%s458_s4] sm:$0xff] }
   0x8   :  { %259 = vmatprep.subr.bf16.mxu0 %v258_v15  ;;  %287 = vmatprep.subr.bf16.mxu1 %v258_v15  ;;  %v270_v30 = vpack.c.bf16 %v58_v27, %v57_v26  ;;  %v62_v37 = vmul.f32 %v343_v2, %v44_v34  ;;  %v63_v41 = vmul.f32 %v343_v2, %v45_v38  ;;  %v72_v45 = vld [vmem:[%s456_s2 + $0x18] sm:$0xff]  ;;  %v66_v46 = vld [vmem:[#allocation2 + $0x8] sm:$0xff]  ;;  %v177_v62 = vld [vmem:[%s458_s4 + $0x10] sm:$0xff] }
   0x9   :  { %v274_v35 = vpack.c.bf16 %v60_v32, %v59_v31  ;;  %v64_v42 = vmul.f32 %v343_v2, %v46_v39  ;;  %v65_v48 = vld [vmem:[#allocation2] sm:$0xff]  ;;  %v67_v49 = vld [vmem:[#allocation2 + $0x10] sm:$0xff]  ;;  %v176_v58 = vld [vmem:[%s458_s4 + $0x8] sm:$0xff]  ;;  %v180_v1 = vmul.f32 %v179_v59, %v175_v61  ;;  %v182_v2 = vmul.f32 %v179_v59, %v177_v62 }
   0xa   :  { %v278_v40 = vpack.c.bf16 %v62_v37, %v61_v36  ;;  %v68_v47 = vld [vmem:[#allocation2 + $0x18] sm:$0xff]  ;;  %v181_v63 = vmul.f32 %v179_v59, %v176_v58 }
   0xb   :  { %261 = vmatpush3.bf16.msra.mxu0 %v258_v15  ;;  %295 = vmatpush3.bf16.msra.mxu1 %v258_v15  ;;  %v282_v43 = vpack.c.bf16 %v64_v42, %v63_v41  ;;  %v178_v60 = vld [vmem:[%s458_s4 + $0x18] sm:$0xff] }
   0xc   :  { %263 = vmatprep.subr.bf16.mxu0 %v262_v20  ;;  %288 = vmatprep.subr.bf16.mxu1 %v262_v20  ;;  %v183_v0 = vmul.f32 %v179_v59, %v178_v60 }
   0xf   :  { %265 = vmatpush3.bf16.msra.mxu0 %v262_v20  ;;  %296 = vmatpush3.bf16.msra.mxu1 %v262_v20 }
  0x10   :  { %267 = vmatprep.subr.bf16.mxu0 %v266_v25  ;;  %289 = vmatprep.subr.bf16.mxu1 %v266_v25 }
  0x13   :  { %269 = vmatpush3.bf16.msra.mxu0 %v266_v25  ;;  %297 = vmatpush3.bf16.msra.mxu1 %v266_v25 }
  0x14   :  { %271 = vmatprep.subr.bf16.mxu0 %v270_v30  ;;  %290 = vmatprep.subr.bf16.mxu1 %v270_v30 }
  0x17   :  { %273 = vmatpush3.bf16.msra.mxu0 %v270_v30  ;;  %298 = vmatpush3.bf16.msra.mxu1 %v270_v30 }
  0x18   :  { %275 = vmatprep.subr.bf16.mxu0 %v274_v35  ;;  %291 = vmatprep.subr.bf16.mxu1 %v274_v35 }
  0x1b   :  { %277 = vmatpush3.bf16.msra.mxu0 %v274_v35  ;;  %299 = vmatpush3.bf16.msra.mxu1 %v274_v35 }
  0x1c   :  { %279 = vmatprep.subr.bf16.mxu0 %v278_v40  ;;  %292 = vmatprep.subr.bf16.mxu1 %v278_v40 }
  0x1f   :  { %281 = vmatpush3.bf16.msra.mxu0 %v278_v40  ;;  %300 = vmatpush3.bf16.msra.mxu1 %v278_v40 }
  0x20   :  { %283 = vmatprep.subr.bf16.mxu0 %v282_v43  ;;  %293 = vmatprep.subr.bf16.mxu1 %v282_v43 }
  0x23   :  { %285 = vmatpush3.bf16.msra.mxu0 %v282_v43  ;;  %301 = vmatpush3.bf16.msra.mxu1 %v282_v43 }
  0x26   :  { %249 = vmatmul.mubr.f32.vlgmr.msra.gmra.mrb[0].mxu0 %v70_v44  ;;  %252 = vmatmul.mubr.f32.vlgmr.msra.gmra.mrb[0].mxu1 %v72_v45 }
  0xf9   :  { %v250_v50 = vpop.f32.mrb[0].mxu0  ;;  %v253_v51 = vpop.f32.mrb[0].mxu1 }
  0xfa   :  { %v159_v52 = vadd.f32 %v250_v50, %v66_v46  ;;  %v161_v53 = vadd.f32 %v253_v51, %v68_v47  ;;  %v139_v54 = vpop.f32.mrb[1].mxu0  ;;  %v149_v55 = vpop.f32.mrb[1].mxu1 }
  0xfb   :  { %v158_v56 = vadd.f32 %v139_v54, %v65_v48  ;;  %v160_v57 = vadd.f32 %v149_v55, %v67_v49 }
  0xfc   :  { %164 = vst.msk [vmem:[#allocation2 + $0x8] sm:$0xff] %vm26_vm0, %v159_v52  ;;  %166 = vst.msk [vmem:[#allocation2 + $0x18] sm:$0xff] %vm26_vm0, %v161_v53 }
  0xfd   :  { %163 = vst.msk [vmem:[#allocation2] sm:$0xff] %vm26_vm0, %v158_v56  ;;  %165 = vst.msk [vmem:[#allocation2 + $0x10] sm:$0xff] %vm26_vm0, %v160_v57 }
 0x103   :  { %v171_v3 = vld [vmem:[#allocation2 + $0x8] sm:$0xff]  ;;  %v173_v4 = vld [vmem:[#allocation2 + $0x18] sm:$0xff] }
 0x104   :  { %v185_v5 = vadd.f32 %v181_v63, %v171_v3  ;;  %v187_v6 = vadd.f32 %v183_v0, %v173_v4  ;;  %v170_v7 = vld [vmem:[#allocation2] sm:$0xff]  ;;  %v172_v8 = vld [vmem:[#allocation2 + $0x10] sm:$0xff] }
 0x105   :  { %v184_v9 = vadd.f32 %v180_v1, %v170_v7  ;;  %v186_v10 = vadd.f32 %v182_v2, %v172_v8 }
 0x106   :  { %189 = vst.msk [vmem:[%s459_s5 + $0x8] sm:$0xff] %vm26_vm0, %v185_v5  ;;  %191 = vst.msk [vmem:[%s459_s5 + $0x18] sm:$0xff] %vm26_vm0, %v187_v6 }
 0x107   :  { %188 = vst.msk [vmem:[%s459_s5] sm:$0xff] %vm26_vm0, %v184_v9  ;;  %190 = vst.msk [vmem:[%s459_s5 + $0x10] sm:$0xff] %vm26_vm0, %v186_v10 }

</bundles_post_ra>
